<compile_context>
chip_gen: v7x
topology: tpu7x:2x2x1
jax: 0.10.0
libtpu: 0.0.40
codegen_flags: <defaults>
</compile_context>

<pallas_src>
import math

import jax
import jax.numpy as jnp
from jax.experimental import pallas as pl
from jax.experimental.pallas import tpu as pltpu


def build_positional_encoding(d_model: int, max_len: int, dtype=jnp.float32) -> jnp.ndarray:
    """PositionalEncoding buffer, mirroring the PyTorch __init__.

    Built ONCE at module-init time, already in the activation dtype
    (review: avoid the per-call slice + cast of the full buffer).
    Returns shape (max_len, d_model).
    """
    position = jnp.arange(0, max_len, dtype=jnp.float32)[:, None]             # (max_len, 1)
    div_term = jnp.exp(
        jnp.arange(0, d_model, 2, dtype=jnp.float32) * (-math.log(10000.0) / d_model)
    )                                                                          # (d_model/2,)
    angles = position * div_term                                               # (max_len, d_model/2)
    pe = jnp.zeros((max_len, d_model), dtype=jnp.float32)
    pe = pe.at[:, 0::2].set(jnp.sin(angles))
    pe = pe.at[:, 1::2].set(jnp.cos(angles))
    return pe.astype(dtype)


def _embed_pe_kernel(src_ref, w_ref, pe_ref, o_ref):
    # src_ref: (TB, S, 1)  per-(batch, position) scalar feature (src.unsqueeze(2))
    # w_ref:   (1, D)      Feat_embedding weight column
    # pe_ref:  (S, D)      positional encoding rows (broadcast over batch)
    # o_ref:   (TB, S, D)
    o_ref[...] = src_ref[...] * w_ref[...][None, :, :] + pe_ref[...][None, :, :]


def _target_block_bytes() -> int:
    """Per-block DMA target derived from this generation's VMEM capacity.

    ~1-4 MiB blocks sit at the measured HBM-roofline sweet spot; capping at
    capacity/16 keeps double-buffered out+src blocks plus the resident pe/w
    comfortably inside even v7x's 64 MiB VMEM.
    """
    try:
        cap = int(getattr(pltpu.get_tpu_info(), "vmem_capacity_bytes", 64 << 20))
    except Exception:  # interpret mode / unexpected backend
        cap = 64 << 20
    return max(1 << 20, min(4 << 20, cap // 16))


def _choose_batch_tile(batch: int, row_bytes: int, target_bytes: int) -> int:
    """Largest divisor of `batch` whose (TB, S, D) block stays <= target_bytes."""
    if batch * row_bytes <= target_bytes:
        return batch
    cap = max(1, target_bytes // row_bytes)
    for tb in range(min(cap, batch), 0, -1):
        if batch % tb == 0:          # exact divisor -> no ragged tail, unmasked stores
            return tb
    return 1


def feat_embedding_with_pos(src: jnp.ndarray, feat_w: jnp.ndarray, pe_s: jnp.ndarray) -> jnp.ndarray:
    """Fused forward: pos(Feat_embedding(src.unsqueeze(2))).

    src:    (B, S)  input features (src, or tgt = src2tgt(src) with S = 1)
    feat_w: (D,)    Feat_embedding weight, i.e. nn.Linear(1, D, bias=False).weight[:, 0]
    pe_s:   (S, D)  positional-encoding rows for this sequence length,
                    pre-sliced/cast at module build time.
    Returns (B, S, D).
    """
    B, S = src.shape
    D = feat_w.shape[0]
    assert pe_s.shape == (S, D)

    dtype = src.dtype
    itemsize = jnp.dtype(dtype).itemsize

    src3 = src[:, :, None]                          # literal src.unsqueeze(2): (B, S, 1)
    w2 = feat_w.astype(dtype).reshape(1, D)
    pe_s = pe_s.astype(dtype)

    row_bytes = S * D * itemsize
    TB = _choose_batch_tile(B, row_bytes, _target_block_bytes())
    num_b_tiles = B // TB

    # Double-buffered out + src blocks, single resident pe + w block, + headroom.
    out_block_bytes = TB * row_bytes
    vmem_need = 2 * out_block_bytes + 2 * TB * S * itemsize + row_bytes + D * itemsize
    vmem_limit = int(min(max(vmem_need + (2 << 20), 8 << 20), 32 << 20))

    cost = pl.CostEstimate(
        flops=2 * B * S * D,                                   # mul + add
        transcendentals=0,
        bytes_accessed=(B * S + D + S * D + B * S * D) * itemsize,
    )

    return pl.pallas_call(
        _embed_pe_kernel,
        out_shape=jax.ShapeDtypeStruct((B, S, D), dtype),
        grid=(num_b_tiles,),
        in_specs=[
            # src: (TB, S, 1) — last two dims are full extents, always layout-legal.
            pl.BlockSpec((TB, S, 1), lambda b: (b, 0, 0)),
            # w / pe: block index constant across the grid -> DMA'd only once.
            pl.BlockSpec((1, D), lambda b: (0, 0)),
            pl.BlockSpec((S, D), lambda b: (0, 0)),
        ],
        # D = 512 lane-dense output, TB*S rows per step -> large unmasked stores.
        out_specs=pl.BlockSpec((TB, S, D), lambda b: (b, 0, 0)),
        compiler_params=pltpu.CompilerParams(
            dimension_semantics=("parallel",),
            vmem_limit_bytes=vmem_limit,
        ),
        cost_estimate=cost,
        # No input_output_aliases: output shape differs from every input, and
        # aliasing without genuine buffer donation only adds a defensive copy.
    )(src3, w2, pe_s)


if __name__ == "__main__":
    # Shapes implied by Transformer_src2tgt: batch=2, src sequence length 20,
    # d_model=512, max_len=100; decoder input length 1 (tgt = src2tgt(src)).
    B, SRC_LEN, D, MAX_LEN = 2, 20, 512, 100

    key = jax.random.PRNGKey(0)
    k_src, k_w, k_w2, k_b2 = jax.random.split(key, 4)
    src = jax.random.normal(k_src, (B, SRC_LEN), dtype=jnp.float32)
    feat_w = 0.02 * jax.random.normal(k_w, (D,), dtype=jnp.float32)        # Linear(1,512,no bias)
    s2t_w = 0.05 * jax.random.normal(k_w2, (1, SRC_LEN), dtype=jnp.float32)  # Linear(20,1)
    s2t_b = jax.random.normal(k_b2, (1,), dtype=jnp.float32)

    # "Module init": pe built once in the activation dtype, sliced once per
    # known sequence length (encoder S=20, decoder S=1).
    pe_full = build_positional_encoding(D, MAX_LEN, dtype=jnp.float32)     # (100, 512)
    pe_enc = pe_full[:SRC_LEN]
    pe_dec = pe_full[:1]

    # Encoder input: pos(Feat_embedding(src.unsqueeze(2)))
    enc_in = feat_embedding_with_pos(src, feat_w, pe_enc)
    # Decoder input: tgt = src2tgt(src) (tiny 20->1 Linear in plain JAX),
    # then pos(Feat_embedding(tgt.unsqueeze(2))).
    tgt = src @ s2t_w.T + s2t_b                                            # (B, 1)
    dec_in = feat_embedding_with_pos(tgt, feat_w, pe_dec)

    enc_in, dec_in = jax.block_until_ready((enc_in, dec_in))

    # Pure-JAX references.
    ref_enc = src[:, :, None] * feat_w[None, None, :] + pe_enc[None]
    ref_dec = tgt[:, :, None] * feat_w[None, None, :] + pe_dec[None]

    assert enc_in.shape == (B, SRC_LEN, D)
    assert dec_in.shape == (B, 1, D)
    assert jnp.allclose(enc_in, ref_enc, atol=1e-5, rtol=1e-5), "encoder-input mismatch"
    assert jnp.allclose(dec_in, ref_dec, atol=1e-5, rtol=1e-5), "decoder-input mismatch"

    print("KERNEL_OK")
</pallas_src>

<mosaic_0001>
module attributes {stable_mosaic.version = 11 : i64} {
  func.func @_embed_pe_kernel(%arg0: i32, %arg1: memref<2x20x1xf32, #tpu.memory_space<vmem>>, %arg2: memref<1x512xf32, #tpu.memory_space<vmem>>, %arg3: memref<20x512xf32, #tpu.memory_space<vmem>>, %arg4: memref<2x20x512xf32, #tpu.memory_space<vmem>>) attributes {dimension_semantics = [#tpu.dimension_semantics<parallel>], iteration_bounds = array<i64: 1>, scalar_prefetch = 0 : i64, scratch_operands = 0 : i64, tpu.core_type = #tpu.core_type<tc>, window_params = [{transform_indices = @transform_0, window_bounds = array<i64: 2, 20, 1>}, {pipeline_mode = #tpu.pipeline_mode<synchronous>, transform_indices = @transform_1, window_bounds = array<i64: 1, 512>}, {pipeline_mode = #tpu.pipeline_mode<synchronous>, transform_indices = @transform_2, window_bounds = array<i64: 20, 512>}, {transform_indices = @transform_3, window_bounds = array<i64: 2, 20, 512>}]} {
    %c0 = arith.constant 0 : index
    %c0_0 = arith.constant 0 : index
    %c0_1 = arith.constant 0 : index
    %0 = vector.load %arg1[%c0, %c0_0, %c0_1] : memref<2x20x1xf32, #tpu.memory_space<vmem>>, vector<2x20x1xf32>
    %c0_2 = arith.constant 0 : index
    %c0_3 = arith.constant 0 : index
    %1 = vector.load %arg2[%c0_2, %c0_3] : memref<1x512xf32, #tpu.memory_space<vmem>>, vector<1x512xf32>
    %2 = vector.shape_cast %1 : vector<1x512xf32> to vector<1x1x512xf32>
    %3 = vector.broadcast %0 : vector<2x20x1xf32> to vector<2x20x512xf32>
    %4 = vector.broadcast %2 : vector<1x1x512xf32> to vector<2x20x512xf32>
    %5 = arith.mulf %3, %4 : vector<2x20x512xf32>
    %c0_4 = arith.constant 0 : index
    %c0_5 = arith.constant 0 : index
    %6 = vector.load %arg3[%c0_4, %c0_5] : memref<20x512xf32, #tpu.memory_space<vmem>>, vector<20x512xf32>
    %7 = vector.shape_cast %6 : vector<20x512xf32> to vector<1x20x512xf32>
    %8 = vector.broadcast %7 : vector<1x20x512xf32> to vector<2x20x512xf32>
    %9 = arith.addf %5, %8 : vector<2x20x512xf32>
    %c0_6 = arith.constant 0 : index
    %c0_7 = arith.constant 0 : index
    %c0_8 = arith.constant 0 : index
    %10 = vector.load %arg4[%c0_6, %c0_7, %c0_8] : memref<2x20x512xf32, #tpu.memory_space<vmem>>, vector<2x20x512xf32>
    tpu.vector_store %arg4[%c0_6, %c0_7, %c0_8], %9 {strides = array<i32>} : memref<2x20x512xf32, #tpu.memory_space<vmem>>, vector<2x20x512xf32>,
    return
  }
  func.func @transform_0(%arg0: i32) -> (i32, i32, i32) {
    %c0_i32 = arith.constant 0 : i32
    %c0_i32_0 = arith.constant 0 : i32
    %c0_i32_1 = arith.constant 0 : i32
    return %arg0, %c0_i32, %c0_i32_0 : i32, i32, i32
  }
  func.func @transform_1(%arg0: i32) -> (i32, i32) {
    %c0_i32 = arith.constant 0 : i32
    %c0_i32_0 = arith.constant 0 : i32
    %c0_i32_1 = arith.constant 0 : i32
    return %c0_i32, %c0_i32_0 : i32, i32
  }
  func.func @transform_2(%arg0: i32) -> (i32, i32) {
    %c0_i32 = arith.constant 0 : i32
    %c0_i32_0 = arith.constant 0 : i32
    %c0_i32_1 = arith.constant 0 : i32
    return %c0_i32, %c0_i32_0 : i32, i32
  }
  func.func @transform_3(%arg0: i32) -> (i32, i32, i32) {
    %c0_i32 = arith.constant 0 : i32
    %c0_i32_0 = arith.constant 0 : i32
    %c0_i32_1 = arith.constant 0 : i32
    return %arg0, %c0_i32, %c0_i32_0 : i32, i32, i32
  }
}

</mosaic_0001>

<bundles_post_ra>
// kernel: tpu_custom_call.1
= control target key start
LH: loop header
LB: loop body
LE: loop exit
PB: predicated region body
PF: predicated region fallthrough
CT: control target
= control target key end

     0   :  { %8 = vsyncpa [#allocation3], 0  ;;  %s205_s12 = smov [#allocation2]   ;;  %s382_s0 = inlined_call_operand.vmem [shape: f32[2,20,1], index: 0, kind: input, shape index: {}]   ;;  %s383_s1 = inlined_call_operand.vmem [shape: f32[1,512], index: 1, kind: input, shape index: {}]   ;;  %s384_s2 = inlined_call_operand.hbm [shape: f32[20,512], index: 2, kind: input, shape index: {}]   ;;  %s385_s3 = inlined_call_operand.vmem [shape: f32[2,20,512], index: 3, kind: output, shape index: {}]  }
   0x1   :  { %s18_s13 = sshll.u32 %s205_s12, 4  ;;  %s181_s16 = scalar_lea.hbm %s384_s2, 1536  ;;  %s19_s13 = int_to_ptr.vmem [resolvable:$true] %s18_s13 }
   0x2   :  { %p182_p0 = scmp.ne.s32.totalorder %s384_s2, %s181_s16  ;;  %p185_p1 = scmp.lt.u32.totalorder %s181_s16, %s384_s2 }
   0x4   :  { %p187_p2 = pnand %p185_p1, %p182_p0 }
   0x6   :  { %190 = shalt.err (!%p187_p2)
}
   0x7   :  { %s191_s21 = scalar_lea.vmem %s19_s13, 1536  ;;  %p196_p4 = scmp.lt.s32.totalorder %s19_s13, %s19_s13 }
   0x8   :  { %p192_p3 = scmp.ne.s32.totalorder %s19_s13, %s191_s21  ;;  %p197_p5 = scmp.lt.s32.totalorder %s191_s21, %s191_s21 }
   0xa   :  { %p198_p6 = por %p197_p5, %p196_p4 }
   0xc   :  { %p199_p7 = pnand %p198_p6, %p192_p3 }
   0xe   :  { %202 = shalt.err (!%p199_p7)
}
   0xf   :  { %s206_s22 = smov 512   ;;  %s207_s23 = smov 32  }
  0x10   :  { %24 = dma.hbm_to_vmem [thread:$0]  %s384_s2, 1536, %s19_s13, [#allocation3], %s206_s22, %s206_s22, %s207_s23  }
  0x11   :  { %203 = dma.done.wait [#allocation3], 1536  }
  0x12   :  { %204 = vsyncadd [#allocation3], 4294965760  ;;  %v208_v0 = vmov 0   ;;  %v30_v1 = vld [vmem:[%s382_s0 + $0x10] sm:$0xf]  ;;  %v28_v2 = vld [vmem:[%s382_s0] sm:$0xff]  ;;  %v66_v7 = vlaneseq }
  0x13   :  { %180 = vset.pattern.permute.xlu1 %v208_v0  ;;  %179 = vset.pattern.permute.xlu0 %v208_v0  ;;  %v31_v3 = vld [vmem:[%s382_s0 + $0x18] sm:$0xff]  ;;  %v29_v4 = vld [vmem:[%s382_s0 + $0x8] sm:$0xff]  ;;  %v32_v6 = vld [vmem:[%s382_s0 + $0x20] sm:$0xff] }
  0x14   :  { %47 = vperm.xlu1 %180, %v30_v1   ;;  %37 = vperm.xlu0 %179, %v28_v2   ;;  %v33_v5 = vld [vmem:[%s382_s0 + $0x28] sm:$0xf]  ;;  %v67_v8 = vshrl.u32 %v66_v7, 7  ;;  %v34_v13 = vld [vmem:[%s383_s1] sm:$0xf]  ;;  %v112_v30 = vld [vmem:[#allocation2 + $0x10] sm:$0xff] }
  0x15   :  { %v110_v18 = vld [vmem:[#allocation2] sm:$0xff]  ;;  %v272_v22 = vld [vmem:[#allocation2 + $0x48] sm:$0xf]  ;;  %v274_v23 = vld [vmem:[#allocation2 + $0x50] sm:$0xf] }
  0x16   :  { %v68_v9 = vsub.s32 0, %v67_v8  ;;  %v72_v10 = vsub.s32 1, %v67_v8  ;;  %v76_v11 = vsub.s32 2, %v67_v8  ;;  %v80_v12 = vsub.s32 3, %v67_v8  ;;  %v270_v19 = vld [vmem:[#allocation2 + $0x40] sm:$0xf] }
  0x17   :  { %v276_v24 = vld [vmem:[#allocation2 + $0x58] sm:$0xf]  ;;  %v111_v29 = vld [vmem:[#allocation2 + $0x8] sm:$0xff]  ;;  %v114_v46 = vld [vmem:[#allocation2 + $0x20] sm:$0xff] }
  0x18   :  { %52 = vperm.xlu1 %180, %v31_v3   ;;  %42 = vperm.xlu0 %179, %v29_v4   ;;  %v262_v14 = vrot.slane %v34_v13, %v68_v9  ;;  %v264_v15 = vrot.slane %v34_v13, %v72_v10  ;;  %v266_v16 = vrot.slane %v34_v13, %v76_v11  ;;  %v113_v31 = vld [vmem:[#allocation2 + $0x18] sm:$0xff]  ;;  %v115_v51 = vld [vmem:[#allocation2 + $0x28] sm:$0xff]  ;;  %v116_v52 = vld [vmem:[#allocation2 + $0x30] sm:$0xff] }
  0x19   :  { %v268_v17 = vrot.slane %v34_v13, %v80_v12  ;;  %v117_v53 = vld [vmem:[#allocation2 + $0x38] sm:$0xff] }
  0x1c   :  { %62 = vperm.xlu1 %180, %v33_v5   ;;  %57 = vperm.xlu0 %179, %v32_v6  }
  0x93   :  { %v48_v20 = vpop.permute.xlu1 %47  ;;  %v38_v21 = vpop.permute.xlu0 %37 }
  0x94   :  { %v94_v25 = vmul.f32 %v262_v14, %v48_v20  ;;  %v95_v26 = vmul.f32 %v264_v15, %v48_v20  ;;  %v96_v27 = vmul.f32 %v266_v16, %v48_v20  ;;  %v97_v28 = vmul.f32 %v268_v17, %v48_v20 }
  0x95   :  { %v86_v32 = vmul.f32 %v262_v14, %v38_v21  ;;  %v87_v33 = vmul.f32 %v264_v15, %v38_v21  ;;  %v88_v34 = vmul.f32 %v266_v16, %v38_v21  ;;  %v89_v35 = vmul.f32 %v268_v17, %v38_v21 }
  0x96   :  { %v130_v36 = vadd.f32 %v270_v19, %v94_v25  ;;  %v131_v37 = vadd.f32 %v272_v22, %v95_v26  ;;  %v132_v38 = vadd.f32 %v274_v23, %v96_v27  ;;  %v133_v39 = vadd.f32 %v276_v24, %v97_v28 }
  0x97   :  { %v122_v40 = vadd.f32 %v110_v18, %v86_v32  ;;  %v123_v41 = vadd.f32 %v111_v29, %v87_v33  ;;  %v124_v42 = vadd.f32 %v112_v30, %v88_v34  ;;  %v125_v43 = vadd.f32 %v113_v31, %v89_v35  ;;  %v53_v44 = vpop.permute.xlu1 %52  ;;  %v43_v45 = vpop.permute.xlu0 %42 }
  0x98   :  { %v98_v47 = vmul.f32 %v262_v14, %v53_v44  ;;  %v99_v48 = vmul.f32 %v264_v15, %v53_v44  ;;  %v100_v49 = vmul.f32 %v266_v16, %v53_v44  ;;  %v101_v50 = vmul.f32 %v268_v17, %v53_v44  ;;  %154 = vst [vmem:[%s385_s3 + $0x40] sm:$0xf] %v130_v36 }
  0x99   :  { %155 = vst [vmem:[%s385_s3 + $0x48] sm:$0xf] %v131_v37  ;;  %156 = vst [vmem:[%s385_s3 + $0x50] sm:$0xf] %v132_v38  ;;  %v90_v54 = vmul.f32 %v262_v14, %v43_v45  ;;  %v91_v55 = vmul.f32 %v264_v15, %v43_v45  ;;  %v92_v56 = vmul.f32 %v266_v16, %v43_v45 }
  0x9a   :  { %157 = vst [vmem:[%s385_s3 + $0x58] sm:$0xf] %v133_v39  ;;  %146 = vst [vmem:[%s385_s3] sm:$0xff] %v122_v40  ;;  %v93_v57 = vmul.f32 %v268_v17, %v43_v45  ;;  %v134_v58 = vadd.f32 %v110_v18, %v98_v47  ;;  %v135_v59 = vadd.f32 %v111_v29, %v99_v48 }
  0x9b   :  { %147 = vst [vmem:[%s385_s3 + $0x8] sm:$0xff] %v123_v41  ;;  %148 = vst [vmem:[%s385_s3 + $0x10] sm:$0xff] %v124_v42  ;;  %v136_v60 = vadd.f32 %v112_v30, %v100_v49  ;;  %v137_v61 = vadd.f32 %v113_v31, %v101_v50  ;;  %v63_v62 = vpop.permute.xlu1 %62  ;;  %v126_v63 = vadd.f32 %v114_v46, %v90_v54  ;;  %v58_v3 = vpop.permute.xlu0 %57 }
  0x9c   :  { %149 = vst [vmem:[%s385_s3 + $0x18] sm:$0xff] %v125_v43  ;;  %v127_v0 = vadd.f32 %v115_v51, %v91_v55  ;;  %v128_v1 = vadd.f32 %v116_v52, %v92_v56  ;;  %v129_v2 = vadd.f32 %v117_v53, %v93_v57  ;;  %158 = vst [vmem:[%s385_s3 + $0x60] sm:$0xff] %v134_v58 }
  0x9d   :  { %159 = vst [vmem:[%s385_s3 + $0x68] sm:$0xff] %v135_v59  ;;  %160 = vst [vmem:[%s385_s3 + $0x70] sm:$0xff] %v136_v60  ;;  %v106_v4 = vmul.f32 %v262_v14, %v63_v62  ;;  %v107_v5 = vmul.f32 %v264_v15, %v63_v62  ;;  %v108_v6 = vmul.f32 %v266_v16, %v63_v62 }
  0x9e   :  { %161 = vst [vmem:[%s385_s3 + $0x78] sm:$0xff] %v137_v61  ;;  %v109_v7 = vmul.f32 %v268_v17, %v63_v62  ;;  %150 = vst [vmem:[%s385_s3 + $0x20] sm:$0xff] %v126_v63  ;;  %v102_v8 = vmul.f32 %v262_v14, %v58_v3  ;;  %v103_v9 = vmul.f32 %v264_v15, %v58_v3 }
  0x9f   :  { %151 = vst [vmem:[%s385_s3 + $0x28] sm:$0xff] %v127_v0  ;;  %152 = vst [vmem:[%s385_s3 + $0x30] sm:$0xff] %v128_v1  ;;  %v104_v10 = vmul.f32 %v266_v16, %v58_v3  ;;  %v105_v11 = vmul.f32 %v268_v17, %v58_v3  ;;  %v142_v12 = vadd.f32 %v270_v19, %v106_v4 }
  0xa0   :  { %153 = vst [vmem:[%s385_s3 + $0x38] sm:$0xff] %v129_v2  ;;  %v143_v13 = vadd.f32 %v272_v22, %v107_v5  ;;  %v144_v18 = vadd.f32 %v274_v23, %v108_v6  ;;  %v145_v20 = vadd.f32 %v276_v24, %v109_v7  ;;  %v138_v21 = vadd.f32 %v114_v46, %v102_v8 }
  0xa1   :  { %v139_v25 = vadd.f32 %v115_v51, %v103_v9  ;;  %v140_v26 = vadd.f32 %v116_v52, %v104_v10  ;;  %v141_v27 = vadd.f32 %v117_v53, %v105_v11  ;;  %166 = vst [vmem:[%s385_s3 + $0xa0] sm:$0xf] %v142_v12 }
  0xa2   :  { %167 = vst [vmem:[%s385_s3 + $0xa8] sm:$0xf] %v143_v13  ;;  %168 = vst [vmem:[%s385_s3 + $0xb0] sm:$0xf] %v144_v18 }
  0xa3   :  { %169 = vst [vmem:[%s385_s3 + $0xb8] sm:$0xf] %v145_v20  ;;  %162 = vst [vmem:[%s385_s3 + $0x80] sm:$0xff] %v138_v21 }
  0xa4   :  { %163 = vst [vmem:[%s385_s3 + $0x88] sm:$0xff] %v139_v25  ;;  %164 = vst [vmem:[%s385_s3 + $0x90] sm:$0xff] %v140_v26 }
  0xa5   :  { %165 = vst [vmem:[%s385_s3 + $0x98] sm:$0xff] %v141_v27 }
  0xa6   :  { %174 = vsyncpa [#allocation3], 1 }

</bundles_post_ra>
